<compile_context>
chip_gen: v5e
topology: v5e:2x2
jax: 0.10.0
libtpu: 0.0.40
codegen_flags: <defaults>
</compile_context>

<pallas_src>
import jax
import jax.numpy as jnp
from jax.experimental import pallas as pl
from jax.experimental.pallas import tpu as pltpu

IN_FEATURES = 625
HIDDEN = 50
OUT_FEATURES = 10


def head_kernel(x_ref, w1_ref, b1_ref, w2_ref, b2_ref, o_ref):
    # fc1 + ReLU  (MXU; f32 accumulation regardless of input dtype)
    h = jnp.dot(x_ref[...], w1_ref[...], preferred_element_type=jnp.float32)
    h = jnp.maximum(h + b1_ref[...], 0.0)                     # bias broadcast (1, 50)

    # F.dropout(x, training=self.training): identity in eval mode.
    # TODO(synk): training-mode dropout (p=0.5, pltpu.prng_*) not implemented — eval semantics only.

    # fc2
    logits = jnp.dot(h, w2_ref[...], preferred_element_type=jnp.float32)
    logits = logits + b2_ref[...]                             # bias broadcast (1, 10)

    # log_softmax over dim=1 (class axis), numerically stable; exp/log done once.
    m = jnp.max(logits, axis=1, keepdims=True)
    z = logits - m
    lse = jnp.log(jnp.sum(jnp.exp(z), axis=1, keepdims=True))
    o_ref[...] = (z - lse).astype(o_ref.dtype)


def _round_up(n, m):
    return ((n + m - 1) // m) * m


def _tpu_defaults():
    """(default batch tile, TensorCores per chip) from the device kind."""
    try:
        kind = jax.devices()[0].device_kind.lower()
    except Exception:
        return 2048, 1
    if "v5" in kind or "v6" in kind:
        return 2048, 1          # 1 TC/chip; 16/32 MiB scoped-VMEM defaults
    # v7x and newer: ~3.2 TB/s HBM, 64 MiB physical VMEM, 2 TensorCores/chip.
    return 4096, 2


def test_head_forward(x, w1, b1, w2, b2, *, block_b=None):
    """x: (B, 625); w1: (625, 50); b1: (1, 50); w2: (50, 10); b2: (1, 10).
    Returns (B, 10) f32 log-probabilities (eval-mode forward)."""
    B, F = x.shape
    assert F == IN_FEATURES and w1.shape == (IN_FEATURES, HIDDEN)

    default_tb, n_cores = _tpu_defaults()
    if block_b is None:
        block_b = default_tb

    # Batch tile: multiple of 8 (sublane), no larger than the (rounded-up) batch.
    tb = _round_up(min(block_b, _round_up(B, 8)), 8)
    # On 2-TC chips make sure both cores get grid work when B allows.
    if n_cores >= 2 and B > 8:
        tb = min(tb, max(8, _round_up(pl.cdiv(B, 2), 8)))

    grid = (pl.cdiv(B, tb),)

    # Safety valve for user-supplied oversized tiles: raise the scoped-VMEM
    # limit only if the double-buffered working set would exceed the smallest
    # per-generation default.  (Defaults chosen above always fit.)
    lane_pad = _round_up(IN_FEATURES, 128)
    need = (2 * tb * lane_pad * jnp.dtype(x.dtype).itemsize   # x, double-buffered
            + 2 * tb * 128 * 4                                # out (lane-padded), double-buffered
            + (2 << 20))                                      # weights + slack
    compiler_kwargs = dict(dimension_semantics=("parallel",))
    if need > (28 << 20):
        compiler_kwargs["vmem_limit_bytes"] = int(need + (8 << 20))

    itemsize_x = jnp.dtype(x.dtype).itemsize
    itemsize_w = jnp.dtype(w1.dtype).itemsize
    flops = 2 * B * (IN_FEATURES * HIDDEN + HIDDEN * OUT_FEATURES)
    bytes_accessed = (B * IN_FEATURES * itemsize_x
                      + (IN_FEATURES * HIDDEN + HIDDEN) * itemsize_w
                      + (HIDDEN * OUT_FEATURES + OUT_FEATURES) * 4
                      + B * OUT_FEATURES * 4)

    return pl.pallas_call(
        head_kernel,
        out_shape=jax.ShapeDtypeStruct((B, OUT_FEATURES), jnp.float32),
        grid=grid,
        in_specs=[
            pl.BlockSpec((tb, IN_FEATURES), lambda i: (i, 0)),       # x: batch-tiled, no padding
            pl.BlockSpec((IN_FEATURES, HIDDEN), lambda i: (0, 0)),   # w1: VMEM-resident
            pl.BlockSpec((1, HIDDEN), lambda i: (0, 0)),             # b1
            pl.BlockSpec((HIDDEN, OUT_FEATURES), lambda i: (0, 0)),  # w2
            pl.BlockSpec((1, OUT_FEATURES), lambda i: (0, 0)),       # b2
        ],
        out_specs=pl.BlockSpec((tb, OUT_FEATURES), lambda i: (i, 0)),
        compiler_params=pltpu.CompilerParams(**compiler_kwargs),
        cost_estimate=pl.CostEstimate(
            flops=flops,
            transcendentals=B * (OUT_FEATURES + 1),
            bytes_accessed=bytes_accessed),
    )(x, w1, b1, w2, b2)


def init_params(key):
    """Deterministic init mimicking nn.Linear's uniform(-1/sqrt(fan_in), 1/sqrt(fan_in))."""
    k1, k2, k3, k4 = jax.random.split(key, 4)
    bound1 = 1.0 / (IN_FEATURES ** 0.5)
    bound2 = 1.0 / (HIDDEN ** 0.5)
    # Stored pre-transposed: (in, out)
    w1 = jax.random.uniform(k1, (IN_FEATURES, HIDDEN), jnp.float32, -bound1, bound1)
    b1 = jax.random.uniform(k2, (1, HIDDEN), jnp.float32, -bound1, bound1)
    w2 = jax.random.uniform(k3, (HIDDEN, OUT_FEATURES), jnp.float32, -bound2, bound2)
    b2 = jax.random.uniform(k4, (1, OUT_FEATURES), jnp.float32, -bound2, bound2)
    return w1, b1, w2, b2


if __name__ == "__main__":
    key = jax.random.PRNGKey(0)
    kx, kp = jax.random.split(key)

    # Small test shapes: batch=8, in_features=625 (per the module's fc1).
    B = 8
    x = jax.random.normal(kx, (B, IN_FEATURES), jnp.float32)
    w1, b1, w2, b2 = init_params(kp)

    out = test_head_forward(x, w1, b1, w2, b2)
    out = jax.block_until_ready(out)

    # Sanity check against pure-JAX reference (eval-mode semantics).
    h_ref = jnp.maximum(x @ w1 + b1, 0.0)
    logits_ref = h_ref @ w2 + b2
    ref = jax.nn.log_softmax(logits_ref, axis=1)
    assert out.shape == (B, OUT_FEATURES)
    assert jnp.allclose(out, ref, atol=1e-5, rtol=1e-5)

    print("KERNEL_OK")
</pallas_src>

<mosaic_0001>
module attributes {stable_mosaic.version = 11 : i64} {
  func.func @head_kernel(%arg0: i32, %arg1: memref<8x625xf32, #tpu.memory_space<vmem>>, %arg2: memref<625x50xf32, #tpu.memory_space<vmem>>, %arg3: memref<1x50xf32, #tpu.memory_space<vmem>>, %arg4: memref<50x10xf32, #tpu.memory_space<vmem>>, %arg5: memref<1x10xf32, #tpu.memory_space<vmem>>, %arg6: memref<8x10xf32, #tpu.memory_space<vmem>>) attributes {dimension_semantics = [#tpu.dimension_semantics<parallel>], iteration_bounds = array<i64: 1>, scalar_prefetch = 0 : i64, scratch_operands = 0 : i64, tpu.core_type = #tpu.core_type<tc>, window_params = [{transform_indices = @transform_0, window_bounds = array<i64: 8, 625>}, {pipeline_mode = #tpu.pipeline_mode<synchronous>, transform_indices = @transform_1, window_bounds = array<i64: 625, 50>}, {pipeline_mode = #tpu.pipeline_mode<synchronous>, transform_indices = @transform_2, window_bounds = array<i64: 1, 50>}, {pipeline_mode = #tpu.pipeline_mode<synchronous>, transform_indices = @transform_3, window_bounds = array<i64: 50, 10>}, {pipeline_mode = #tpu.pipeline_mode<synchronous>, transform_indices = @transform_4, window_bounds = array<i64: 1, 10>}, {transform_indices = @transform_5, window_bounds = array<i64: 8, 10>}]} {
    %c0 = arith.constant 0 : index
    %c0_0 = arith.constant 0 : index
    %0 = vector.load %arg1[%c0, %c0_0] : memref<8x625xf32, #tpu.memory_space<vmem>>, vector<8x625xf32>
    %c0_1 = arith.constant 0 : index
    %c0_2 = arith.constant 0 : index
    %1 = vector.load %arg2[%c0_1, %c0_2] : memref<625x50xf32, #tpu.memory_space<vmem>>, vector<625x50xf32>
    %cst = arith.constant dense<0.000000e+00> : vector<8x50xf32>
    %2 = tpu.matmul %0, %1, %cst {dimension_numbers = #tpu.dot_dimension_numbers<[1], [0], [0], [1], [0, 0, 1, 1], [], []>} : vector<8x625xf32>, vector<625x50xf32>, vector<8x50xf32> -> vector<8x50xf32>
    %c0_3 = arith.constant 0 : index
    %c0_4 = arith.constant 0 : index
    %3 = vector.load %arg3[%c0_3, %c0_4] : memref<1x50xf32, #tpu.memory_space<vmem>>, vector<1x50xf32>
    %4 = vector.broadcast %3 : vector<1x50xf32> to vector<8x50xf32>
    %5 = arith.addf %2, %4 : vector<8x50xf32>
    %cst_5 = arith.constant 0.000000e+00 : f32
    %6 = vector.broadcast %cst_5 : f32 to vector<8x50xf32>
    %7 = arith.maximumf %5, %6 : vector<8x50xf32>
    %c0_6 = arith.constant 0 : index
    %c0_7 = arith.constant 0 : index
    %8 = vector.load %arg4[%c0_6, %c0_7] : memref<50x10xf32, #tpu.memory_space<vmem>>, vector<50x10xf32>
    %cst_8 = arith.constant dense<0.000000e+00> : vector<8x10xf32>
    %9 = tpu.matmul %7, %8, %cst_8 {dimension_numbers = #tpu.dot_dimension_numbers<[1], [0], [0], [1], [0, 0, 1, 1], [], []>} : vector<8x50xf32>, vector<50x10xf32>, vector<8x10xf32> -> vector<8x10xf32>
    %c0_9 = arith.constant 0 : index
    %c0_10 = arith.constant 0 : index
    %10 = vector.load %arg5[%c0_9, %c0_10] : memref<1x10xf32, #tpu.memory_space<vmem>>, vector<1x10xf32>
    %11 = vector.broadcast %10 : vector<1x10xf32> to vector<8x10xf32>
    %12 = arith.addf %9, %11 : vector<8x10xf32>
    %cst_11 = arith.constant dense<0xFF800000> : vector<8xf32>
    %13 = vector.multi_reduction <maximumf>, %12, %cst_11 [1] : vector<8x10xf32> to vector<8xf32>
    %14 = vector.shape_cast %13 : vector<8xf32> to vector<8x1xf32>
    %15 = vector.broadcast %14 : vector<8x1xf32> to vector<8x10xf32>
    %16 = arith.subf %12, %15 : vector<8x10xf32>
    %17 = math.exp %16 : vector<8x10xf32>
    %cst_12 = arith.constant dense<0.000000e+00> : vector<8xf32>
    %18 = vector.multi_reduction <add>, %17, %cst_12 [1] : vector<8x10xf32> to vector<8xf32>
    %19 = vector.shape_cast %18 : vector<8xf32> to vector<8x1xf32>
    %20 = math.log %19 : vector<8x1xf32>
    %21 = vector.broadcast %20 : vector<8x1xf32> to vector<8x10xf32>
    %22 = arith.subf %16, %21 : vector<8x10xf32>
    %c0_13 = arith.constant 0 : index
    %c0_14 = arith.constant 0 : index
    %23 = vector.load %arg6[%c0_13, %c0_14] : memref<8x10xf32, #tpu.memory_space<vmem>>, vector<8x10xf32>
    tpu.vector_store %arg6[%c0_13, %c0_14], %22 {strides = array<i32>} : memref<8x10xf32, #tpu.memory_space<vmem>>, vector<8x10xf32>,
    return
  }
  func.func @transform_0(%arg0: i32) -> (i32, i32) {
    %c0_i32 = arith.constant 0 : i32
    %c0_i32_0 = arith.constant 0 : i32
    return %arg0, %c0_i32 : i32, i32
  }
  func.func @transform_1(%arg0: i32) -> (i32, i32) {
    %c0_i32 = arith.constant 0 : i32
    %c0_i32_0 = arith.constant 0 : i32
    %c0_i32_1 = arith.constant 0 : i32
    return %c0_i32, %c0_i32_0 : i32, i32
  }
  func.func @transform_2(%arg0: i32) -> (i32, i32) {
    %c0_i32 = arith.constant 0 : i32
    %c0_i32_0 = arith.constant 0 : i32
    %c0_i32_1 = arith.constant 0 : i32
    return %c0_i32, %c0_i32_0 : i32, i32
  }
  func.func @transform_3(%arg0: i32) -> (i32, i32) {
    %c0_i32 = arith.constant 0 : i32
    %c0_i32_0 = arith.constant 0 : i32
    %c0_i32_1 = arith.constant 0 : i32
    return %c0_i32, %c0_i32_0 : i32, i32
  }
  func.func @transform_4(%arg0: i32) -> (i32, i32) {
    %c0_i32 = arith.constant 0 : i32
    %c0_i32_0 = arith.constant 0 : i32
    %c0_i32_1 = arith.constant 0 : i32
    return %c0_i32, %c0_i32_0 : i32, i32
  }
  func.func @transform_5(%arg0: i32) -> (i32, i32) {
    %c0_i32 = arith.constant 0 : i32
    %c0_i32_0 = arith.constant 0 : i32
    return %arg0, %c0_i32 : i32, i32
  }
}

</mosaic_0001>

<bundles_post_ra>
// kernel: tpu_custom_call.1
= control target key start
LH: loop header
LB: loop body
LE: loop exit
PB: predicated region body
PF: predicated region fallthrough
CT: control target
= control target key end

     0   :  { %s640_s0 = inlined_call_operand.vmem [shape: f32[8,625], index: 0, kind: input, shape index: {}]   ;;  %s641_s1 = inlined_call_operand.vmem [shape: f32[625,50], index: 1, kind: input, shape index: {}]   ;;  %s642_s2 = inlined_call_operand.vmem [shape: f32[1,50], index: 2, kind: input, shape index: {}]   ;;  %s643_s3 = inlined_call_operand.vmem [shape: f32[50,10], index: 3, kind: input, shape index: {}]   ;;  %s644_s4 = inlined_call_operand.vmem [shape: f32[1,10], index: 4, kind: input, shape index: {}]   ;;  %s645_s5 = inlined_call_operand.hbm [shape: f32[8,10], index: 5, kind: output, shape index: {}]  }
   0x1   :  { %v41_v0 = vld [vmem:[%s641_s1 + $0x78] sm:$0xff]  ;;  %v40_v1 = vld [vmem:[%s641_s1 + $0x70] sm:$0xff]  ;;  %v39_v2 = vld [vmem:[%s641_s1 + $0x68] sm:$0xff] }
   0x2   :  { %117 = vmatpush.msra.mxu0 %v41_v0  ;;  %v73_v3 = vld [vmem:[%s641_s1 + $0x178] sm:$0xff]  ;;  %v38_v4 = vld [vmem:[%s641_s1 + $0x60] sm:$0xff]  ;;  %v72_v5 = vld [vmem:[%s641_s1 + $0x170] sm:$0xff] }
   0x3   :  { %157 = vmatpush.msra.mxu2 %v73_v3  ;;  %v89_v6 = vld [vmem:[%s641_s1 + $0x1f8] sm:$0xff]  ;;  %v71_v8 = vld [vmem:[%s641_s1 + $0x168] sm:$0xff]  ;;  %v88_v9 = vld [vmem:[%s641_s1 + $0x1f0] sm:$0xff] }
   0x4   :  { %118 = vmatpush.msra.mxu0 %v40_v1  ;;  %177 = vmatpush.msra.mxu3 %v89_v6  ;;  %v57_v7 = vld [vmem:[%s641_s1 + $0xf8] sm:$0xff]  ;;  %v56_v11 = vld [vmem:[%s641_s1 + $0xf0] sm:$0xff]  ;;  %v70_v12 = vld [vmem:[%s641_s1 + $0x160] sm:$0xff] }
   0x5   :  { %v37_v10 = vld [vmem:[%s641_s1 + $0x58] sm:$0xff]  ;;  %158 = vmatpush.msra.mxu2 %v72_v5  ;;  %137 = vmatpush.msra.mxu1 %v57_v7  ;;  %v87_v13 = vld [vmem:[%s641_s1 + $0x1e8] sm:$0xff]  ;;  %v36_v15 = vld [vmem:[%s641_s1 + $0x50] sm:$0xff] }
   0x6   :  { %119 = vmatpush.msra.mxu0 %v39_v2  ;;  %178 = vmatpush.msra.mxu3 %v88_v9  ;;  %v55_v14 = vld [vmem:[%s641_s1 + $0xe8] sm:$0xff]  ;;  %v86_v16 = vld [vmem:[%s641_s1 + $0x1e0] sm:$0xff]  ;;  %v69_v17 = vld [vmem:[%s641_s1 + $0x158] sm:$0xff] }
   0x7   :  { %159 = vmatpush.msra.mxu2 %v71_v8  ;;  %138 = vmatpush.msra.mxu1 %v56_v11  ;;  %v54_v18 = vld [vmem:[%s641_s1 + $0xe0] sm:$0xff]  ;;  %v35_v19 = vld [vmem:[%s641_s1 + $0x48] sm:$0xff]  ;;  %v85_v20 = vld [vmem:[%s641_s1 + $0x1d8] sm:$0xff] }
   0x8   :  { %120 = vmatpush.msra.mxu0 %v38_v4  ;;  %179 = vmatpush.msra.mxu3 %v87_v13  ;;  %v68_v21 = vld [vmem:[%s641_s1 + $0x150] sm:$0xff]  ;;  %v53_v22 = vld [vmem:[%s641_s1 + $0xd8] sm:$0xff]  ;;  %v34_v23 = vld [vmem:[%s641_s1 + $0x40] sm:$0xff] }
   0x9   :  { %160 = vmatpush.msra.mxu2 %v70_v12  ;;  %139 = vmatpush.msra.mxu1 %v55_v14  ;;  %v84_v24 = vld [vmem:[%s641_s1 + $0x1d0] sm:$0xff]  ;;  %v67_v25 = vld [vmem:[%s641_s1 + $0x148] sm:$0xff]  ;;  %v33_v27 = vld [vmem:[%s641_s1 + $0x38] sm:$0xff] }
   0xa   :  { %121 = vmatpush.msra.mxu0 %v37_v10  ;;  %180 = vmatpush.msra.mxu3 %v86_v16  ;;  %v52_v26 = vld [vmem:[%s641_s1 + $0xd0] sm:$0xff]  ;;  %v83_v28 = vld [vmem:[%s641_s1 + $0x1c8] sm:$0xff]  ;;  %v66_v29 = vld [vmem:[%s641_s1 + $0x140] sm:$0xff] }
   0xb   :  { %161 = vmatpush.msra.mxu2 %v69_v17  ;;  %140 = vmatpush.msra.mxu1 %v54_v18  ;;  %v51_v30 = vld [vmem:[%s641_s1 + $0xc8] sm:$0xff]  ;;  %v32_v31 = vld [vmem:[%s641_s1 + $0x30] sm:$0xff]  ;;  %v82_v32 = vld [vmem:[%s641_s1 + $0x1c0] sm:$0xff] }
   0xc   :  { %122 = vmatpush.msra.mxu0 %v36_v15  ;;  %181 = vmatpush.msra.mxu3 %v85_v20  ;;  %v65_v33 = vld [vmem:[%s641_s1 + $0x138] sm:$0xff]  ;;  %v50_v34 = vld [vmem:[%s641_s1 + $0xc0] sm:$0xff]  ;;  %v31_v35 = vld [vmem:[%s641_s1 + $0x28] sm:$0xff] }
   0xd   :  { %162 = vmatpush.msra.mxu2 %v68_v21  ;;  %141 = vmatpush.msra.mxu1 %v53_v22  ;;  %v81_v36 = vld [vmem:[%s641_s1 + $0x1b8] sm:$0xff]  ;;  %v64_v37 = vld [vmem:[%s641_s1 + $0x130] sm:$0xff]  ;;  %v30_v39 = vld [vmem:[%s641_s1 + $0x20] sm:$0xff] }
   0xe   :  { %123 = vmatpush.msra.mxu0 %v35_v19  ;;  %182 = vmatpush.msra.mxu3 %v84_v24  ;;  %v49_v38 = vld [vmem:[%s641_s1 + $0xb8] sm:$0xff]  ;;  %v80_v40 = vld [vmem:[%s641_s1 + $0x1b0] sm:$0xff]  ;;  %v63_v41 = vld [vmem:[%s641_s1 + $0x128] sm:$0xff] }
   0xf   :  { %163 = vmatpush.msra.mxu2 %v67_v25  ;;  %142 = vmatpush.msra.mxu1 %v52_v26  ;;  %v48_v42 = vld [vmem:[%s641_s1 + $0xb0] sm:$0xff]  ;;  %v29_v43 = vld [vmem:[%s641_s1 + $0x18] sm:$0xff]  ;;  %v79_v44 = vld [vmem:[%s641_s1 + $0x1a8] sm:$0xff] }
  0x10   :  { %124 = vmatpush.msra.mxu0 %v34_v23  ;;  %183 = vmatpush.msra.mxu3 %v83_v28  ;;  %v62_v45 = vld [vmem:[%s641_s1 + $0x120] sm:$0xff]  ;;  %v47_v46 = vld [vmem:[%s641_s1 + $0xa8] sm:$0xff]  ;;  %v28_v47 = vld [vmem:[%s641_s1 + $0x10] sm:$0xff] }
  0x11   :  { %164 = vmatpush.msra.mxu2 %v66_v29  ;;  %143 = vmatpush.msra.mxu1 %v51_v30  ;;  %v78_v48 = vld [vmem:[%s641_s1 + $0x1a0] sm:$0xff]  ;;  %v61_v49 = vld [vmem:[%s641_s1 + $0x118] sm:$0xff]  ;;  %v27_v51 = vld [vmem:[%s641_s1 + $0x8] sm:$0xff] }
  0x12   :  { %125 = vmatpush.msra.mxu0 %v33_v27  ;;  %184 = vmatpush.msra.mxu3 %v82_v32  ;;  %v46_v50 = vld [vmem:[%s641_s1 + $0xa0] sm:$0xff]  ;;  %v77_v53 = vld [vmem:[%s641_s1 + $0x198] sm:$0xff]  ;;  %v60_v54 = vld [vmem:[%s641_s1 + $0x110] sm:$0xff] }
  0x13   :  { %165 = vmatpush.msra.mxu2 %v65_v33  ;;  %144 = vmatpush.msra.mxu1 %v50_v34  ;;  %v26_v52 = vld [vmem:[%s641_s1] sm:$0xff]  ;;  %v45_v55 = vld [vmem:[%s641_s1 + $0x98] sm:$0xff]  ;;  %v76_v56 = vld [vmem:[%s641_s1 + $0x190] sm:$0xff] }
  0x14   :  { %126 = vmatpush.msra.mxu0 %v32_v31  ;;  %185 = vmatpush.msra.mxu3 %v81_v36 }
  0x15   :  { %166 = vmatpush.msra.mxu2 %v64_v37  ;;  %145 = vmatpush.msra.mxu1 %v49_v38 }
  0x16   :  { %127 = vmatpush.msra.mxu0 %v31_v35  ;;  %186 = vmatpush.msra.mxu3 %v80_v40 }
  0x17   :  { %167 = vmatpush.msra.mxu2 %v63_v41  ;;  %146 = vmatpush.msra.mxu1 %v48_v42 }
  0x18   :  { %128 = vmatpush.msra.mxu0 %v30_v39  ;;  %187 = vmatpush.msra.mxu3 %v79_v44 }
  0x19   :  { %168 = vmatpush.msra.mxu2 %v62_v45  ;;  %147 = vmatpush.msra.mxu1 %v47_v46 }
  0x1a   :  { %129 = vmatpush.msra.mxu0 %v29_v43  ;;  %188 = vmatpush.msra.mxu3 %v78_v48 }
  0x1b   :  { %169 = vmatpush.msra.mxu2 %v61_v49  ;;  %148 = vmatpush.msra.mxu1 %v46_v50 }
  0x1c   :  { %130 = vmatpush.msra.mxu0 %v28_v47 }
  0x1d   :  { %10 = vsyncpa [#allocation3], 0  ;;  %v104_v57 = vld [vmem:[%s641_s1 + $0x270] sm:$0x1]  ;;  %vm113_vm0 = vcmask 1040384   ;;  %189 = vmatpush.msra.mxu3 %v77_v53  ;;  %v59_v58 = vld [vmem:[%s641_s1 + $0x108] sm:$0xff]  ;;  %170 = vmatpush.msra.mxu2 %v60_v54 }
  0x1e   :  { %131 = vmatpush.msra.mxu0 %v27_v51  ;;  %149 = vmatpush.msra.mxu1 %v45_v55  ;;  %v44_v59 = vld [vmem:[%s641_s1 + $0x90] sm:$0xff]  ;;  %v75_v60 = vld [vmem:[%s641_s1 + $0x188] sm:$0xff]  ;;  %v58_v62 = vld [vmem:[%s641_s1 + $0x100] sm:$0xff]  ;;  %vm109_vm1 = vcmask 924672   ;;  %vm233_vm2 = vcmask 1041408   ;;  %vm229_vm3 = vcmask 408576  }
  0x1f   :  { %v103_v61 = vld [vmem:[%s641_s1 + $0x268] sm:$0xff]  ;;  %190 = vmatpush.msra.mxu3 %v76_v56  ;;  %171 = vmatpush.msra.mxu2 %v59_v58  ;;  %v23_v63 = vld [vmem:[%s640_s0 + $0x10] sm:$0xff]  ;;  %v102_v1 = vld [vmem:[%s641_s1 + $0x260] sm:$0xff]  ;;  %vm257_vm4 = vcmask 80896   ;;  %s278_s28 = sshll.u32 %s645_s5, 4  ;;  %s279_s28 = int_to_ptr.hbm [resolvable:$true] %s278_s28 }
  0x20   :  { %132 = vmatpush.msra.mxu0 %v26_v52  ;;  %v43_v0 = vld [vmem:[%s641_s1 + $0x88] sm:$0xff]  ;;  %150 = vmatpush.msra.mxu1 %v44_v59  ;;  %v74_v2 = vld [vmem:[%s641_s1 + $0x180] sm:$0xff]  ;;  %v24_v4 = vld [vmem:[%s640_s0 + $0x18] sm:$0xff] }
  0x21   :  { %191 = vmatpush.msra.mxu3 %v75_v60  ;;  %172 = vmatpush.msra.mxu2 %v58_v62  ;;  %v21_v3 = vld [vmem:[%s640_s0] sm:$0xff]  ;;  %v101_v5 = vld [vmem:[%s641_s1 + $0x258] sm:$0xff]  ;;  %v22_v7 = vld [vmem:[%s640_s0 + $0x8] sm:$0xff] }
  0x22   :  { %287 = vmatpush.msk.msrb.mxu0 %vm113_vm0, %v104_v57  ;;  %173 = vmatmul.f32.vlgmr.msra.gmra.mxu2 %v23_v63  ;;  %v42_v6 = vld [vmem:[%s641_s1 + $0x80] sm:$0xff]  ;;  %v100_v8 = vld [vmem:[%s641_s1 + $0x250] sm:$0xff]  ;;  %v99_v9 = vld [vmem:[%s641_s1 + $0x248] sm:$0xff] }
  0x23   :  { %151 = vmatpush.msra.mxu1 %v43_v0  ;;  %192 = vmatpush.msra.mxu3 %v74_v2  ;;  %v98_v10 = vld [vmem:[%s641_s1 + $0x240] sm:$0xff]  ;;  %v97_v11 = vld [vmem:[%s641_s1 + $0x238] sm:$0xff]  ;;  %v96_v12 = vld [vmem:[%s641_s1 + $0x230] sm:$0xff] }
  0x24   :  { %199 = vmatpush.msrb.mxu0 %v103_v61  ;;  %193 = vmatmul.f32.vlgmr.msra.gmra.mxu3 %v24_v4  ;;  %v95_v13 = vld [vmem:[%s641_s1 + $0x228] sm:$0xff]  ;;  %v94_v14 = vld [vmem:[%s641_s1 + $0x220] sm:$0xff]  ;;  %v93_v15 = vld [vmem:[%s641_s1 + $0x218] sm:$0xff] }
  0x25   :  { %133 = vmatmul.f32.vlgmr.msra.gmra.mxu0 %v21_v3  ;;  %152 = vmatpush.msra.mxu1 %v42_v6  ;;  %v92_v16 = vld [vmem:[%s641_s1 + $0x210] sm:$0xff]  ;;  %v91_v17 = vld [vmem:[%s641_s1 + $0x208] sm:$0xff]  ;;  %v90_v18 = vld [vmem:[%s641_s1 + $0x200] sm:$0xff] }
  0x26   :  { %200 = vmatpush.msrb.mxu0 %v102_v1  ;;  %153 = vmatmul.f32.vlgmr.msra.gmra.mxu1 %v22_v7  ;;  %v25_v19 = vld [vmem:[%s640_s0 + $0x20] sm:$0xff]  ;;  %v224_v20 = vld [vmem:[%s643_s3 + $0x30] sm:$0x3]  ;;  %v223_v21 = vld [vmem:[%s643_s3 + $0x28] sm:$0xff] }
  0x27   :  { %289 = vmatpush.msk.msrb.mxu1 %vm233_vm2, %v224_v20  ;;  %v222_v22 = vld [vmem:[%s643_s3 + $0x20] sm:$0xff]  ;;  %v221_v23 = vld [vmem:[%s643_s3 + $0x18] sm:$0xff]  ;;  %v220_v24 = vld [vmem:[%s643_s3 + $0x10] sm:$0xff] }
  0x28   :  { %201 = vmatpush.msrb.mxu0 %v101_v5  ;;  %v219_v25 = vld [vmem:[%s643_s3 + $0x8] sm:$0xff]  ;;  %v218_v26 = vld [vmem:[%s643_s3] sm:$0xff] }
  0x29   :  { %247 = vmatpush.msrb.mxu1 %v223_v21  ;;  %v292_v27 = vld [vmem:[%s642_s2] ss:$0 sm:$0xff]  ;;  %s324_s2 = smov [#allocation2]  }
  0x2a   :  { %202 = vmatpush.msrb.mxu0 %v100_v8  ;;  %v293_v39 = vld [vmem:[%s644_s4] ss:$0 sm:$0xff]  ;;  %s276_s26 = sshll.u32 %s324_s2, 4  ;;  %s277_s26 = int_to_ptr.vmem [resolvable:$true] %s276_s26 }
  0x2b   :  { %248 = vmatpush.msrb.mxu1 %v222_v22 }
  0x2c   :  { %203 = vmatpush.msrb.mxu0 %v99_v9 }
  0x2d   :  { %249 = vmatpush.msrb.mxu1 %v221_v23 }
  0x2e   :  { %204 = vmatpush.msrb.mxu0 %v98_v10 }
  0x2f   :  { %250 = vmatpush.msrb.mxu1 %v220_v24 }
  0x30   :  { %205 = vmatpush.msrb.mxu0 %v97_v11 }
  0x31   :  { %251 = vmatpush.msrb.mxu1 %v219_v25 }
  0x32   :  { %206 = vmatpush.msrb.mxu0 %v96_v12 }
  0x33   :  { %252 = vmatpush.msrb.mxu1 %v218_v26 }
  0x34   :  { %207 = vmatpush.msrb.mxu0 %v95_v13 }
  0x36   :  { %208 = vmatpush.msrb.mxu0 %v94_v14 }
  0x38   :  { %209 = vmatpush.msrb.mxu0 %v93_v15 }
  0x3a   :  { %210 = vmatpush.msrb.mxu0 %v92_v16 }
  0x3c   :  { %211 = vmatpush.msrb.mxu0 %v91_v17 }
  0x3e   :  { %212 = vmatpush.msrb.mxu0 %v90_v18 }
  0x3f   :  { %288 = vmatmul.msk.f32.vlgmr.msrb.gmra.mxu0 %vm109_vm1, %v25_v19 }
  0xa2   :  { %v134_v28 = vpop.f32.mrf.mxu0 }
  0xa3   :  { %v135_v29 = vadd.f32 %v292_v27, %v134_v28  ;;  %v154_v30 = vpop.f32.mrf.mxu1 }
  0xa5   :  { %v155_v31 = vadd.f32 %v154_v30, %v135_v29  ;;  %v174_v32 = vpop.f32.mrf.mxu2 }
  0xa7   :  { %v175_v33 = vadd.f32 %v174_v32, %v155_v31  ;;  %v194_v34 = vpop.f32.mrf.mxu3 }
  0xa9   :  { %v195_v35 = vadd.f32 %v194_v34, %v175_v33 }
  0xbc   :  { %v214_v36 = vpop.f32.mrf.mxu0 }
  0xbd   :  { %v215_v37 = vadd.f32 %v214_v36, %v195_v35 }
  0xbf   :  { %v217_v38 = vmax.f32 %v215_v37, 0.0 }
  0xc1   :  { %290 = vmatmul.msk.f32.vlgmr.msrb.gmra.mxu1 %vm229_vm3, %v217_v38 }
 0x13e   :  { %v254_v40 = vpop.f32.mrf.mxu1 }
 0x13f   :  { %v255_v41 = vadd.f32 %v293_v39, %v254_v40 }
 0x141   :  { %v258_v42 = vsel %vm257_vm4, %v255_v41, -inf }
 0x142   :  { %259 = vmax.xlane.f32.xlu0 %v258_v42 }
 0x1b5   :  { %v260_v43 = vpop.xlane.xlu0 %259 }
 0x1b6   :  { %v261_v44 = vsub.f32 %v255_v41, %v260_v43 }
 0x1b8   :  { %v262_v45 = vmul.f32 1.442695, %v261_v44 }
 0x1ba   :  { %294 = vpow2.f32 %v262_v45 }
 0x1c0   :  { %v295_v46 = vpop.eup %294 }
 0x1c1   :  { %v264_v47 = vsel %vm257_vm4, %v295_v46, 0.0 }
 0x1c2   :  { %265 = vadd.xlane.f32.xlu0 %v264_v47 }
 0x235   :  { %v266_v48 = vpop.xlane.xlu0 %265 }
 0x236   :  { %296 = vlog2.f32 %v266_v48 }
 0x23c   :  { %v297_v49 = vpop.eup %296 }
 0x23d   :  { %v268_v50 = vmul.f32 0.6931472, %v297_v49 }
 0x23f   :  { %v269_v51 = vsub.f32 %v261_v44, %v268_v50 }
 0x241   :  { %270 = vst.msk [vmem:[#allocation2] sm:$0xff] %vm257_vm4, %v269_v51 }
 0x242   :  { %281 = dma.vmem_to_hbm [thread:$0]  %s277_s26, 128, %s279_s28, [#allocation3]  }
 0x243   :  { %322 = dma.done.wait [#allocation3], 128  }
 0x244   :  { %323 = vsyncadd [#allocation3], 4294967168 }
 0x245   :  { %286 = vsyncpa [#allocation3], 1 }

</bundles_post_ra>
